<compile_context>
chip_gen: v7x
topology: tpu7x:2x2x1
jax: 0.10.0
libtpu: 0.0.40
codegen_flags: <defaults>
</compile_context>

<pallas_src>
import numpy as np

import jax
import jax.numpy as jnp
from jax.experimental import pallas as pl
from jax.experimental.pallas import tpu as pltpu

_LANES = 128
_SUBLANES = 8
_TARGET_BLOCK_BYTES = 512 * 1024   # ~512 KiB per input block (1024 rows f32, 2048 bf16)


def _make_class_sum_kernel(block_rows, rb_per_chunk, rows_data, needs_mask):
    groups = block_rows // _SUBLANES

    def kernel(ind_ref, x_ref, out_ref):
        rb = pl.program_id(2)

        @pl.when(rb == 0)
        def _():
            out_ref[...] = jnp.zeros_like(out_ref)

        # Native-dtype block; cast to f32 in-kernel (halves DMA bytes for bf16 input).
        x = x_ref[...].astype(jnp.float32)                     # (1, block_rows, 128)

        if needs_mask:
            # Zero out rows past the end of the valid data.  The nominal row index is
            # derived from program ids, so blocks whose index_map was clamped
            # contribute exactly zero regardless of what data was loaded.
            row0 = (pl.program_id(1) * rb_per_chunk + rb) * block_rows
            local = jax.lax.broadcasted_iota(jnp.int32, x.shape, 1)
            x = jnp.where(row0 + local < rows_data, x, jnp.float32(0.0))

        # (8,128) vector partial: pure VPU adds hidden under DMA, no XLU reduce.
        part = x.reshape(groups, _SUBLANES, _LANES).sum(axis=0)
        out_ref[...] += part.reshape(1, 1, _SUBLANES, _LANES)

    return kernel


def _selected_class_sums(soft_pred, class_ind, max_block_rows=None):
    """sum(soft_pred[ind]) for each ind in class_ind, via a Pallas reduction kernel."""
    num_classes = soft_pred.shape[0]
    spatial = int(np.prod(soft_pred.shape[1:]))
    k_sel = len(class_ind)

    # ---- Layout: lane-dense (channels, rows, 128) view the kernel will read. ----
    if spatial % _LANES == 0 and (spatial // _LANES) >= _SUBLANES:
        # Free reshape of the full tensor: no copy, no cast, no pad.  The kernel
        # gathers the K selected channels itself via the scalar-prefetch index_map.
        rows_data = spatial // _LANES
        x = soft_pred.reshape(num_classes, rows_data, _LANES)
        ind_arr = jnp.asarray(class_ind, dtype=jnp.int32)
    else:
        # Ragged spatial: gather + zero-pad ONLY the K selected channels
        # (native dtype; zeros are sum-safe).
        rows_valid = -(-spatial // _LANES)
        rows_data = max(_SUBLANES, -(-rows_valid // _SUBLANES) * _SUBLANES)
        sel = soft_pred[np.asarray(class_ind, dtype=np.int32)].reshape(k_sel, spatial)
        sel = jnp.pad(sel, ((0, 0), (0, rows_data * _LANES - spatial)))
        x = sel.reshape(k_sel, rows_data, _LANES)
        ind_arr = jnp.arange(k_sel, dtype=jnp.int32)

    # ---- Tiling: large row blocks (multiple of 8 rows) to amortize grid-step cost.
    itemsize = jnp.dtype(soft_pred.dtype).itemsize
    tgt_rows = max(_SUBLANES,
                   (_TARGET_BLOCK_BYTES // (_LANES * itemsize)) // _SUBLANES * _SUBLANES)
    if max_block_rows is not None:
        tgt_rows = max(_SUBLANES, (max_block_rows // _SUBLANES) * _SUBLANES)
    block_rows = min(tgt_rows, (rows_data // _SUBLANES) * _SUBLANES)
    num_blocks = -(-rows_data // block_rows)

    # Split row blocks into 2 parallel chunks so both v7x TensorCores stay streaming
    # even when K is small; single chunk for small volumes (harmless elsewhere).
    n_chunks = 2 if num_blocks >= 4 else 1
    rb_per_chunk = -(-num_blocks // n_chunks)
    coverage_rows = n_chunks * rb_per_chunk * block_rows
    needs_mask = coverage_rows != rows_data
    max_rb = num_blocks - 1

    def in_map(k, c, rb, ind):
        nb = jnp.minimum(c * rb_per_chunk + rb, max_rb)    # clamp overhang blocks
        return (ind[k], nb, 0)

    def out_map(k, c, rb, ind):
        return (k, c, 0, 0)

    kernel = _make_class_sum_kernel(block_rows, rb_per_chunk, rows_data, needs_mask)

    out = pl.pallas_call(
        kernel,
        out_shape=jax.ShapeDtypeStruct((k_sel, n_chunks, _SUBLANES, _LANES),
                                       jnp.float32),
        grid_spec=pltpu.PrefetchScalarGridSpec(
            num_scalar_prefetch=1,                          # class indices -> SMEM
            grid=(k_sel, n_chunks, rb_per_chunk),
            in_specs=[pl.BlockSpec((1, block_rows, _LANES), in_map)],
            out_specs=pl.BlockSpec((1, 1, _SUBLANES, _LANES), out_map),
        ),
        compiler_params=pltpu.CompilerParams(
            dimension_semantics=("parallel", "parallel", "arbitrary")),
    )(ind_arr, x)

    # Finish the chunk / (8,128)-tile partials in the wrapper.
    return out.sum(axis=(1, 2, 3))                          # (K,) f32


def naive_penalty_loss(soft_pred, boundary, class_ind, total, max_block_rows=None):
    """Equivalent to NaivePenalty(boundary, class_ind, total)(soft_pred)."""
    k_sel = len(class_ind)
    assert k_sel > 0 and len(boundary) >= 2 * k_sel

    sums = _selected_class_sums(soft_pred, class_ind, max_block_rows)    # (K,) f32

    lowers = jnp.asarray([boundary[2 * i] for i in range(k_sel)], jnp.float32)
    uppers = jnp.asarray([boundary[2 * i + 1] for i in range(k_sel)], jnp.float32)

    # if val < lower: (lower-val)^2  elif val > upper: (val-upper)^2  else: 0
    too_small = (lowers - sums) ** 2
    too_big = (sums - uppers) ** 2
    pen = jnp.where(sums < lowers, too_small,
                    jnp.where(sums > uppers, too_big, jnp.float32(0.0)))

    loss = jnp.sum(pen)
    loss = loss / float(total)
    loss = loss / float(k_sel)
    return loss


def _naive_penalty_ref(soft_pred, boundary, class_ind, total):
    """Pure-JAX reference: direct transcription of the PyTorch forward."""
    loss = jnp.float32(0.0)
    bound_id = 0
    for ind in class_ind:
        val = jnp.sum(soft_pred[ind].astype(jnp.float32))
        lower = boundary[bound_id]
        upper = boundary[bound_id + 1]
        bound_id += 2
        loss = loss + jnp.where(
            val < lower, (lower - val) ** 2,
            jnp.where(val > upper, (val - upper) ** 2, jnp.float32(0.0)))
    loss = loss / total
    loss = loss / len(class_ind)
    return loss


if __name__ == "__main__":
    root = jax.random.PRNGKey(0)

    def run_case(tag, key, shape, class_ind, boundary, total,
                 dtype=jnp.float32, max_block_rows=None):
        soft_pred = jax.random.uniform(key, shape, dtype=jnp.float32).astype(dtype)
        got = jax.block_until_ready(
            naive_penalty_loss(soft_pred, boundary, class_ind, total,
                               max_block_rows=max_block_rows))
        ref = jax.block_until_ready(
            _naive_penalty_ref(soft_pred, boundary, class_ind, total))
        assert jnp.allclose(got, ref, rtol=1e-4, atol=1e-6), (tag, got, ref)

    k1, k2, k3, k4 = jax.random.split(root, 4)

    # Case 1: lane-aligned spatial (zero-copy path); bounds hit all three branches.
    run_case("aligned", k1, (4, 8, 16, 16), [0, 2, 3],
             [1500.0, 1600.0, 900.0, 1200.0, 500.0, 600.0], 8 * 16 * 16)

    # Case 2: ragged spatial (gather + zero-pad only the selected channels).
    run_case("ragged", k2, (4, 5, 9, 7), [1, 3],
             [200.0, 300.0, 100.0, 120.0], 5 * 9 * 7)

    # Case 3: forced small row blocks -> multi-block accumulation, 2-chunk megacore
    #         split, clamped index_map and in-kernel tail mask (rows=40, block=8).
    run_case("chunk+mask", k3, (3, 5, 32, 32), [0, 1, 2],
             [3000.0, 3100.0, 2400.0, 2700.0, 2000.0, 2100.0], 5 * 32 * 32,
             max_block_rows=8)

    # Case 4: native bf16 input (halved DMA bytes; f32 accumulation in-kernel).
    run_case("bf16", k4, (4, 8, 16, 16), [0, 3],
             [1500.0, 1600.0, 500.0, 600.0], 8 * 16 * 16, dtype=jnp.bfloat16)

    print("KERNEL_OK")
</pallas_src>

<mosaic_0001>
module attributes {stable_mosaic.version = 11 : i64} {
  func.func @kernel(%arg0: i32, %arg1: i32, %arg2: i32, %arg3: memref<3xi32, #tpu.memory_space<smem>>, %arg4: memref<1x16x128xf32, #tpu.memory_space<vmem>>, %arg5: memref<1x1x8x128xf32, #tpu.memory_space<vmem>>) attributes {dimension_semantics = [#tpu.dimension_semantics<parallel>, #tpu.dimension_semantics<parallel>, #tpu.dimension_semantics<arbitrary>], iteration_bounds = array<i64: 3, 1, 1>, scalar_prefetch = 1 : i64, scratch_operands = 0 : i64, tpu.core_type = #tpu.core_type<tc>, window_params = [{transform_indices = @transform_0, window_bounds = array<i64: 1, 16, 128>}, {transform_indices = @transform_1, window_bounds = array<i64: 1, 1, 8, 128>}]} {
    %c0_i32 = arith.constant 0 : i32
    %0 = arith.cmpi eq, %arg2, %c0_i32 : i32
    %1 = arith.extui %0 : i1 to i32
    %c0_i32_0 = arith.constant 0 : i32
    %2 = arith.cmpi ne, %1, %c0_i32_0 : i32
    scf.if %2 {
      %cst_11 = arith.constant 0.000000e+00 : f32
      %10 = vector.broadcast %cst_11 : f32 to vector<1x1x8x128xf32>
      %c0_12 = arith.constant 0 : index
      %c0_13 = arith.constant 0 : index
      %c0_14 = arith.constant 0 : index
      %c0_15 = arith.constant 0 : index
      %11 = vector.load %arg5[%c0_12, %c0_13, %c0_14, %c0_15] : memref<1x1x8x128xf32, #tpu.memory_space<vmem>>, vector<1x1x8x128xf32>
      tpu.vector_store %arg5[%c0_12, %c0_13, %c0_14, %c0_15], %10 {strides = array<i32>} : memref<1x1x8x128xf32, #tpu.memory_space<vmem>>, vector<1x1x8x128xf32>,
    } else {
    }
    %c0 = arith.constant 0 : index
    %c0_1 = arith.constant 0 : index
    %c0_2 = arith.constant 0 : index
    %3 = vector.load %arg4[%c0, %c0_1, %c0_2] : memref<1x16x128xf32, #tpu.memory_space<vmem>>, vector<1x16x128xf32>
    %4 = vector.shape_cast %3 : vector<1x16x128xf32> to vector<2x8x128xf32>
    %cst = arith.constant dense<0.000000e+00> : vector<8x128xf32>
    %5 = vector.multi_reduction <add>, %4, %cst [0] : vector<2x8x128xf32> to vector<8x128xf32>
    %c0_3 = arith.constant 0 : index
    %c0_4 = arith.constant 0 : index
    %c0_5 = arith.constant 0 : index
    %c0_6 = arith.constant 0 : index
    %6 = vector.load %arg5[%c0_3, %c0_4, %c0_5, %c0_6] : memref<1x1x8x128xf32, #tpu.memory_space<vmem>>, vector<1x1x8x128xf32>
    %7 = vector.shape_cast %5 : vector<8x128xf32> to vector<1x1x8x128xf32>
    %8 = arith.addf %6, %7 : vector<1x1x8x128xf32>
    %c0_7 = arith.constant 0 : index
    %c0_8 = arith.constant 0 : index
    %c0_9 = arith.constant 0 : index
    %c0_10 = arith.constant 0 : index
    %9 = vector.load %arg5[%c0_7, %c0_8, %c0_9, %c0_10] : memref<1x1x8x128xf32, #tpu.memory_space<vmem>>, vector<1x1x8x128xf32>
    tpu.vector_store %arg5[%c0_7, %c0_8, %c0_9, %c0_10], %8 {strides = array<i32>} : memref<1x1x8x128xf32, #tpu.memory_space<vmem>>, vector<1x1x8x128xf32>,
    return
  }
  func.func @transform_0(%arg0: i32, %arg1: i32, %arg2: i32, %arg3: memref<3xi32, #tpu.memory_space<smem>>) -> (i32, i32, i32) {
    %c1_i32 = arith.constant 1 : i32
    %0 = arith.muli %arg1, %c1_i32 : i32
    %1 = arith.addi %0, %arg2 : i32
    %c0_i32 = arith.constant 0 : i32
    %2 = arith.minsi %1, %c0_i32 : i32
    %3 = arith.index_cast %arg0 : i32 to index
    %4 = memref.load %arg3[%3] : memref<3xi32, #tpu.memory_space<smem>>
    %c0_i32_0 = arith.constant 0 : i32
    %c0_i32_1 = arith.constant 0 : i32
    return %4, %2, %c0_i32_0 : i32, i32, i32
  }
  func.func @transform_1(%arg0: i32, %arg1: i32, %arg2: i32, %arg3: memref<3xi32, #tpu.memory_space<smem>>) -> (i32, i32, i32, i32) {
    %c0_i32 = arith.constant 0 : i32
    %c0_i32_0 = arith.constant 0 : i32
    %c0_i32_1 = arith.constant 0 : i32
    return %arg0, %arg1, %c0_i32, %c0_i32_0 : i32, i32, i32, i32
  }
}

</mosaic_0001>

<bundles_post_ra>
// kernel: tpu_custom_call.1
= control target key start
LH: loop header
LB: loop body
LE: loop exit
PB: predicated region body
PF: predicated region fallthrough
CT: control target
= control target key end

     0   :  { %s790_s0 = inlined_call_operand.hbm [shape: s32[3], index: 0, kind: input, shape index: {}]   ;;  %s791_s1 = inlined_call_operand.hbm [shape: f32[4,16,128], index: 1, kind: input, shape index: {}]   ;;  %s792_s2 = inlined_call_operand.hbm [shape: f32[3,1,8,128], index: 2, kind: output, shape index: {}]  }
   0x1   :  { %s402_s11 = scalar_lea.hbm %s790_s0, 16 }
   0x2   :  { %p403_p0 = scmp.ne.s32.totalorder %s790_s0, %s402_s11  ;;  %p406_p1 = scmp.lt.u32.totalorder %s402_s11, %s790_s0 }
   0x4   :  { %p408_p2 = pnand %p406_p1, %p403_p0 }
   0x6   :  { %411 = shalt.err (!%p408_p2)  }
   0x7   :  { %s552_s16 = smov [#allocation3]  }
   0x8   :  { %8 = dma.hbm_to_smem %s790_s0, 16, %s552_s16, [#allocation2] }
   0x9   :  { %506 = dma.done.wait [#allocation2], 16 }
   0xa   :  { %507 = vsyncadd [#allocation2], 4294967280 }
   0xb   :  { %10 = sfence }
   0xc   :  { %11 = vsyncpa [#allocation5], 0 }
   0xd   :  { %13 = vsyncpa [#allocation5 + $0x1], 0 }
   0xe   :  { %14 = vsyncpa [#allocation6], 0 }
   0xf   :  { %16 = vsyncpa [#allocation6 + $0x1], 0  ;;  %s584_s19 = smov 0   ;;  %s586_s20 = smov 0  }
  0x10   :  { %s588_s21 = smov 0   ;;  %s590_s22 = smov 0  }
  0x11   :  { %s592_s23 = smov 0   ;;  %s594_s24 = smov 0  }
  0x12   :  { %s596_s0 = smov 0   ;;  %s598_s25 = smov 0  }
  0x13   :  { %s600_s26 = smov 0  }
  0x14 LB: > { %s293_s27 = sadd.s32 4294967295, %s550_s26   ;;  %s294_s28 = sadd.s32 4294967294, %s550_s26   ;;  %s550_s26 = sphi %s600_s26, %s22_s26   ;;  %s546_s25 = sphi %s598_s25, %s811_s25   ;;  %s542_s0 = sphi %s596_s0, %s810_s0   ;;  %s538_s24 = sphi %s594_s24, %s809_s24   ;;  %s534_s23 = sphi %s592_s23, %s808_s23   ;;  %s530_s22 = sphi %s590_s22, %s807_s22   ;;  %s526_s21 = sphi %s588_s21, %s806_s21   ;;  %s522_s20 = sphi %s586_s20, %s805_s20   ;;  %s518_s19 = sphi %s584_s19, %s804_s19  }
  0x15   : > { %s41_s29 = sadd.s32 1, %s546_s25  ;;  %s48_s30 = sld [smem:[#allocation3 + %s546_s25]] }
  0x16   : > { %p43_p3 = scmp.ge.s32.totalorder %s41_s29, 3  ;;  %s58_s3 = sadd.s32 1, %s538_s24 }
  0x17   : > { %p65_p4 = scmp.ne.s32.totalorder %s538_s24, %s534_s23  ;;  %p66_p5 = scmp.eq.s32.totalorder %s550_s26, 0 }
  0x18   : > { %s813_s29 = smov (%p43_p3, %s41_s29), 0  ;;  %p71_p7 = scmp.ne.s32.totalorder %s534_s23, %s530_s22 }
  0x19   : > { %p637_p6 = por %p66_p5, %p65_p4  ;;  %s52_s5 = sld [smem:[#allocation3 + %s813_s29]] }
  0x1a   : > { %p72_p8 = scmp.eq.s32.totalorder %s293_s27, 0  ;;  %s81_s6 = ssub.s32 %s546_s25, %s813_s29 }
  0x1b   : > { %s86_s7 = sadd.s32 1, %s526_s21  ;;  %p84_p10 = scmp.eq.s32.totalorder %s81_s6, 0 }
  0x1c   : > { %p646_p9 = por %p72_p8, %p71_p7  ;;  %p96_p11 = scmp.ne.s32.totalorder %s526_s21, %s522_s20 }
  0x1d   : > { %p97_p12 = scmp.eq.s32.totalorder %s293_s27, 2  ;;  %p102_p0 = scmp.ne.s32.totalorder %s522_s20, %s518_s19 }
  0x1e   : > { %s796_s8 = scalar_select %p646_p9, 1, 0 }
  0x1f   : > { %s653_s9 = scalar_select %p84_p10, %s526_s21, %s86_s7  }
  0x20   : > { %p655_p13 = por %p97_p12, %p96_p11  ;;  %s53_s11 = ssub.s32 %s48_s30, %s52_s5 }
  0x21   : > { %p103_p1 = scmp.eq.s32.totalorder %s294_s28, 2  ;;  %p56_p2 = scmp.eq.s32.totalorder %s53_s11, 0 }
  0x22   : > { %s797_s10 = scalar_select %p655_p13, 1, 0 }
  0x23   : > { %p661_p3 = por %p103_p1, %p102_p0  ;;  %p324_p4 = scmp.lt.s32.totalorder %s550_s26, 3 }
  0x24   : > { %s667_s13 = scalar_select %p56_p2, %s538_s24, %s58_s3  }
  0x25   : > { %s798_s12 = scalar_select %p661_p3, 1, 0 }
  0x26   : > { %s123_s14 = sand.u32 1, %s538_s24   ;;  %p672_p5 = pnand %p324_p4, %p637_p6 }
  0x27   : > { %s297_s16 = sshll.u32 %s123_s14, 4  ;;  %p300_p7 = scmp.ge.s32.totalorder %s550_s26, 1 }
  0x28   : > { %s308_s17 = scalar_select %p637_p6, [#allocation3], [#allocation8] }
  0x29   : > { %s309_s18 = scalar_select %p637_p6, %s546_s25, 0 }
  0x2a   : > { %s815_s17 = smov (!%p324_p4, %s308_s17), [#allocation9]  ;;  %s127_s27 = scalar_lea.vmem [#allocation4], %s297_s16 }
  0x2b   : > { %s817_s18 = smov (!%p324_p4, %s309_s18), 0  ;;  %s140_s28 = sshll.u32 %s127_s27, 4  ;;  %s687_s28 = int_to_ptr.vmem [resolvable:$true] %s140_s28 }
  0x2c   : > { %s131_s22 = sld [smem:[%s815_s17 + %s817_s18]]  ;;  %p148_p8 = scmp.lt.s32.totalorder %s550_s26, 4 }
  0x2d   : > { %s694_s7 = scalar_lea.sflag [#allocation5], %s123_s14  ;;  %p414_p11 = pneg %p672_p5 }
  0x2e   : > { %p683_p10 = pnand %p300_p7, %p148_p8  ;;  %s417_s18 = scalar_lea.hbm %s791_s1, 1024 }
  0x32   : > { %s307_s3 = sshll.u32 %s131_s22, 8 }
  0x33   : > { %s692_s4 = scalar_lea.hbm %s791_s1, %s307_s3 }
  0x34   : > { %s412_s11 = scalar_lea.hbm %s692_s4, 256  ;;  %p418_p1 = scmp.lt.u32.totalorder %s692_s4, %s791_s1 }
  0x35   : > { %p413_p6 = scmp.ne.s32.totalorder %s692_s4, %s412_s11  ;;  %p419_p2 = scmp.lt.u32.totalorder %s417_s18, %s412_s11 }
  0x36   : > { %p421_p7 = scmp.lt.u32.totalorder %s412_s11, %s692_s4 }
  0x37   : > { %p415_p12 = pnand %p414_p11, %p413_p6  ;;  %p420_p4 = por %p419_p2, %p418_p1 }
  0x39   : > { %p416_p0 = pneg %p415_p12  ;;  %p422_p8 = por %p421_p7, %p420_p4 }
  0x3b   : > { %p423_p3 = pnand %p422_p8, %p416_p0 }
  0x3d   : > { %426 = shalt.err (!%p423_p3)
}
  0x3e   : > { %s427_s14 = scalar_lea.vmem %s687_s28, 256  ;;  %s553_s3 = smov [#allocation4]  }
  0x3f   : > { %p428_p6 = scmp.ne.s32.totalorder %s687_s28, %s427_s14  ;;  %s432_s5 = sshll.u32 %s553_s3, 4  ;;  %s433_s5 = int_to_ptr.vmem [resolvable:$false] %s432_s5 }
  0x40   : > { %s434_s6 = scalar_lea.vmem %s433_s5, 512  ;;  %p435_p9 = scmp.lt.s32.totalorder %s687_s28, %s433_s5 }
  0x41   : > { %p430_p12 = pnand %p428_p6, %p414_p11  ;;  %p436_p1 = scmp.lt.s32.totalorder %s434_s6, %s427_s14 }
  0x43   : > { %p431_p13 = pneg %p430_p12  ;;  %p437_p2 = por %p436_p1, %p435_p9 }
  0x45   : > { %p438_p4 = pnand %p437_p2, %p431_p13 }
  0x47   : > { %441 = shalt.err (!%p438_p4)
}
  0x48   : > { %s554_s11 = smov 128   ;;  %s555_s16 = smov 8  }
  0x49   : > { %319 = dma.hbm_to_vmem [thread:$0]  (!%p672_p5), %s692_s4, 256, %s687_s28, %s694_s7, %s554_s11, %s554_s11, %s555_s16  }
  0x4a   : > { %152 = sbr.rel (%p683_p10) target bundleno = 108 (0x6c), region = 24  ;;  %s154_s17 = sand.u32 (!%p683_p10), 1, %s534_s23  }
  0x4b   : > { %s301_s18 = sshll.u32 (!%p683_p10), %s154_s17, 4  ;;  %s155_s22 = scalar_lea.sflag (!%p683_p10), [#allocation5], %s154_s17 }
  0x4c   : > { %s158_s27 = scalar_lea.vmem (!%p683_p10), [#allocation4], %s301_s18  ;;  %p801_p9 = scmp.ne.s32.totalorder (!%p683_p10), %s796_s8, 0 }
  0x51   : > { %509 = dma.done.wait (%p801_p9), %s155_s22, 256  }
  0x52   : > { %511 = vsyncadd (%p801_p9), %s155_s22, 4294967040  ;;  %s174_s14 = sand.u32 1, %s522_s20   ;;  %v187_v0 = vld [vmem:[%s158_s27] sm:$0xff]  ;;  %v188_v1 = vld [vmem:[%s158_s27 + $0x8] sm:$0xff]  ;;  %s304_s28 = sshll.u32 %s542_s0, 7 }
  0x53   : > { %s302_s15 = sshll.u32 %s174_s14, 3  ;;  %v189_v2 = vadd.f32 %v188_v1, %v187_v0  ;;  %s734_s5 = scalar_lea.hbm %s792_s2, %s304_s28 }
  0x54   : > { %s176_s30 = scalar_lea.vmem [#allocation7], %s302_s15  ;;  %s194_s8 = scalar_lea.sflag [#allocation6], %s174_s14 }
  0x55   : > { %s208_s4 = sshll.u32 %s176_s30, 4  ;;  %192 = vst [vmem:[%s176_s30] sm:$0xff] %v189_v2  ;;  %p802_p3 = scmp.ne.s32.totalorder %s797_s10, 0  ;;  %s736_s4 = int_to_ptr.vmem [resolvable:$true] %s208_s4 }
  0x56   : > { %s442_s6 = scalar_lea.vmem %s736_s4, 128  ;;  %s556_s0 = smov [#allocation7]  }
  0x57   : > { %p443_p13 = scmp.ne.s32.totalorder %s736_s4, %s442_s6  ;;  %s446_s11 = sshll.u32 %s556_s0, 4  ;;  %s447_s11 = int_to_ptr.vmem [resolvable:$false] %s446_s11 }
  0x58   : > { %s448_s16 = scalar_lea.vmem %s447_s11, 256  ;;  %p449_p11 = scmp.lt.s32.totalorder %s736_s4, %s447_s11 }
  0x59   : > { %p444_p5 = pnand %p443_p13, %p802_p3  ;;  %p450_p0 = scmp.lt.s32.totalorder %s448_s16, %s442_s6 }
  0x5b   : > { %p445_p10 = pneg %p444_p5  ;;  %p451_p7 = por %p450_p0, %p449_p11 }
  0x5d   : > { %p452_p8 = pnand %p451_p7, %p445_p10 }
  0x5f   : > { %455 = shalt.err (!%p452_p8)
}
  0x60   : > { %s456_s17 = scalar_lea.hbm %s734_s5, 128  ;;  %s460_s27 = scalar_lea.hbm %s792_s2, 384 }
  0x61   : > { %p457_p6 = scmp.ne.s32.totalorder %s734_s5, %s456_s17  ;;  %p461_p2 = scmp.lt.u32.totalorder %s734_s5, %s792_s2 }
  0x62   : > { %p462_p4 = scmp.lt.u32.totalorder %s460_s27, %s456_s17  ;;  %p464_p13 = scmp.lt.u32.totalorder %s456_s17, %s734_s5 }
  0x63   : > { %p458_p12 = pnand %p457_p6, %p802_p3 }
  0x64   : > { %p463_p9 = por %p462_p4, %p461_p2 }
  0x65   : > { %p459_p1 = pneg %p458_p12 }
  0x66   : > { %p465_p5 = por %p464_p13, %p463_p9 }
  0x68   : > { %p466_p10 = pnand %p465_p5, %p459_p1 }
  0x6a   : > { %469 = shalt.err (!%p466_p10)
}
  0x6b   : > { %312 = dma.vmem_to_hbm [thread:$0]  (%p802_p3), %s736_s4, 128, %s734_s5, %s194_s8  }
  0x6c PF: > { %p325_p11 = scmp.ge.s32.totalorder %s550_s26, 2  ;;  %s220_s28 = sand.u32 1, %s518_s19  }
  0x6d   : > { %p803_p0 = scmp.ne.s32.totalorder %s798_s12, 0  ;;  %s221_s30 = scalar_lea.sflag [#allocation6], %s220_s28 }
  0x6f   : > { %p321_p7 = pnand %p325_p11, %p803_p0 }
  0x71   : > { %513 = dma.done.wait (!%p321_p7), %s221_s30, 128  }
  0x72   : > { %515 = vsyncadd (!%p321_p7), %s221_s30, 4294967168  ;;  %s22_s26 = sadd.s32 1, %s550_s26   ;;  %s804_s19 = smov %s522_s20 }
  0x73   : > { %p19_p8 = scmp.ge.s32.totalorder %s22_s26, 5   ;;  %s805_s20 = smov %s526_s21 }
  0x74   : > { %s806_s21 = smov %s653_s9  ;;  %s807_s22 = smov %s534_s23 }
  0x75   : > { %s808_s23 = smov %s538_s24  ;;  %s809_s24 = smov %s667_s13 }
  0x76   : > { %s810_s0 = smov %s546_s25  ;;  %s811_s25 = smov %s813_s29 }
  0x77   :  { %21 = sbr.rel (!%p19_p8) target bundleno = 20 (0x14), region = 73 }
  0x7e   :  { %226 = vsyncpa [#allocation5], 1 }
  0x7f   :  { %228 = vsyncpa [#allocation5 + $0x1], 1 }
  0x80   :  { %229 = vsyncpa [#allocation6], 1 }
  0x81   :  { %231 = vsyncpa [#allocation6 + $0x1], 1 }

</bundles_post_ra>
